<compile_context>
chip_gen: v7x
topology: tpu7x:2x2x1
jax: 0.10.0
libtpu: 0.0.40
codegen_flags: <defaults>
</compile_context>

<pallas_src>
import numpy as np
import jax
import jax.numpy as jnp
from jax.experimental import pallas as pl
from jax.experimental.pallas import tpu as pltpu


def _contact_head_kernel(oi_ref, oj_ref, x_ref, xt_ref, out_ref):
    """One (batch, spatial tile-pair, channel-block, pair-half) grid step.

    x_ref  : (1, Tc, Ts, Ts) = attn[b, c_blk, i_tile, j_tile]
    xt_ref : (1, Tc, Ts, Ts) = attn[b, c_blk, j_tile, i_tile]
    out_ref: (1, Ts, Ts, Tc) = out[b, i_tile, j_tile, c_blk]   (t == 0)
                               out[b, j_tile, i_tile, c_blk]   (t == 1)
    """
    del oi_ref, oj_ref  # only consumed by the index maps
    t = pl.program_id(3)
    x_ij = x_ref[0]
    x_ji = xt_ref[0]

    @pl.when(t == 0)
    def _():
        # out[b, i, j, c] = x[b, c, i, j] + x[b, c, j, i]
        sym = x_ij + jnp.swapaxes(x_ji, -1, -2)
        out_ref[0] = jnp.transpose(sym, (1, 2, 0))

    @pl.when(t == 1)
    def _():
        # out[b, j, i, c] = x[b, c, j, i] + x[b, c, i, j]
        sym = x_ji + jnp.swapaxes(x_ij, -1, -2)
        out_ref[0] = jnp.transpose(sym, (1, 2, 0))


def contact_prediction_head_forward(tokens, attentions,
                                    regression_w=None, regression_b=None):
    """JAX/Pallas equivalent of ContactPredictionHead.forward.

    `tokens` and the regression parameters are unused by the forward pass
    (the PyTorch forward returns before applying self.regression); they are
    accepted only for API parity.
    """
    del tokens, regression_w, regression_b
    B, L, H, S, S2 = attentions.shape
    assert S == S2, "attention maps must be square in the last two dims"
    C = L * H
    x = attentions.reshape(B, C, S, S)            # glue: .view()
    dtype = x.dtype
    itemsize = jnp.dtype(dtype).itemsize

    # --- device VMEM budget ---------------------------------------------------
    try:
        vmem_cap = int(getattr(pltpu.get_tpu_info(), "vmem_capacity_bytes",
                               64 << 20))
    except Exception:  # conservative fallback (v7x physical VMEM)
        vmem_cap = 64 << 20
    headroom = 4 << 20                     # Mosaic internal scratch etc.
    budget = int(vmem_cap * 0.70)          # target for the pipelined working set

    # --- tile sizes -------------------------------------------------------------
    # Lane dims of every block must be a multiple of 128 or equal to the full
    # array dim; sublane dims a multiple of 8 or full dim.  Both spatial tile
    # dims sit in a lane position of one of the two input specs, so both use Ts.
    Ts = S if S <= 128 else 128
    Tc = C if C <= 128 else 128
    # Grow the channel (output-lane) tile for narrow dtypes when C is big enough
    # to fill the larger tile and the double-buffered working set fits the budget.
    while (C >= 2 * Tc and Tc < 512
           and 6 * Ts * Ts * (2 * Tc) * itemsize + headroom <= budget):
        Tc *= 2

    block_bytes = Ts * Ts * Tc * itemsize
    # 2 input streams + 1 output stream, double-buffered, plus headroom;
    # clamped below physical VMEM so the request is always satisfiable.
    vmem_limit = min(max(6 * block_bytes + headroom, 16 << 20),
                     max(vmem_cap - (2 << 20), 16 << 20))

    n_i = pl.cdiv(S, Ts)                   # spatial tiles (edge blocks masked)
    n_c = pl.cdiv(C, Tc)                   # channel blocks (edge blocks masked)

    # Upper-triangular (i <= j) spatial tile pairs.  Flattened (pair, t) output
    # block-index tables (t innermost): t == 0 -> (i, j), t == 1 -> (j, i).
    rows, cols = np.triu_indices(n_i)
    n_pairs = int(rows.shape[0])
    out_i = jnp.asarray(np.stack([rows, cols], axis=1).reshape(-1), jnp.int32)
    out_j = jnp.asarray(np.stack([cols, rows], axis=1).reshape(-1), jnp.int32)

    grid = (B, n_pairs, n_c, 2)

    def a_map(b, p, c, t, oi, oj):         # straight tile  x[b, c_blk, i, j]
        return (b, c, oi[2 * p], oj[2 * p])

    def b_map(b, p, c, t, oi, oj):         # mirrored tile  x[b, c_blk, j, i]
        return (b, c, oi[2 * p + 1], oj[2 * p + 1])

    def o_map(b, p, c, t, oi, oj):         # out[b, ?, ?, c_blk]
        return (b, oi[2 * p + t], oj[2 * p + t], c)

    out = pl.pallas_call(
        _contact_head_kernel,
        out_shape=jax.ShapeDtypeStruct((B, S, S, C), dtype),
        grid_spec=pltpu.PrefetchScalarGridSpec(
            num_scalar_prefetch=2,
            grid=grid,
            in_specs=[
                pl.BlockSpec((1, Tc, Ts, Ts), a_map),
                pl.BlockSpec((1, Tc, Ts, Ts), b_map),
            ],
            out_specs=pl.BlockSpec((1, Ts, Ts, Tc), o_map),
        ),
        compiler_params=pltpu.CompilerParams(
            dimension_semantics=("parallel", "parallel", "parallel", "arbitrary"),
            vmem_limit_bytes=int(vmem_limit),
        ),
    )(out_i, out_j, x, x)
    return out


def init_contact_head_params(in_features, bias=True, seed=0):
    """Deterministic init of the (unused-in-forward) regression layer params."""
    key = jax.random.PRNGKey(seed)
    kw, kb = jax.random.split(key)
    bound = 1.0 / jnp.sqrt(jnp.float32(in_features))
    w = jax.random.uniform(kw, (1, in_features), jnp.float32, -bound, bound)
    b = (jax.random.uniform(kb, (1,), jnp.float32, -bound, bound)
         if bias else None)
    return w, b


def _reference(attentions):
    B, L, H, S, _ = attentions.shape
    x = attentions.reshape(B, L * H, S, S)
    x = x + jnp.swapaxes(x, -1, -2)
    return jnp.transpose(x, (0, 2, 3, 1))


if __name__ == "__main__":
    # --- small demo shapes consistent with the module -------------------------
    B, L, H, S = 2, 2, 4, 8            # C = L*H = 8
    key = jax.random.PRNGKey(0)
    k_tok, k_attn, k_attn2 = jax.random.split(key, 3)
    tokens = jax.random.randint(k_tok, (B, S), 0, 20)                 # unused
    attentions = jax.random.normal(k_attn, (B, L, H, S, S), jnp.float32)
    reg_w, reg_b = init_contact_head_params(L * H, bias=True)

    out = contact_prediction_head_forward(tokens, attentions, reg_w, reg_b)
    out = jax.block_until_ready(out)
    ref = _reference(attentions)
    assert out.shape == (B, S, S, L * H)
    assert jnp.allclose(out, ref, atol=1e-6), "small-shape mismatch vs reference"

    # --- second check: ragged shapes exercise spatial + channel edge blocks ---
    B2, L2, H2, S2 = 1, 5, 40, 144     # C = 200, S = 144 -> partial 128-tiles
    attn2 = jax.random.normal(
        k_attn2, (B2, L2, H2, S2, S2), jnp.float32).astype(jnp.bfloat16)
    out2 = contact_prediction_head_forward(None, attn2)
    out2 = jax.block_until_ready(out2)
    ref2 = _reference(attn2)
    assert out2.shape == (B2, S2, S2, L2 * H2)
    assert jnp.allclose(out2.astype(jnp.float32), ref2.astype(jnp.float32),
                        atol=1e-2, rtol=1e-2), "ragged-shape mismatch vs reference"

    print("KERNEL_OK")
</pallas_src>

<mosaic_0001>
module attributes {stable_mosaic.version = 11 : i64} {
  func.func @_contact_head_kernel(%arg0: i32, %arg1: i32, %arg2: i32, %arg3: i32, %arg4: memref<2xi32, #tpu.memory_space<smem>>, %arg5: memref<2xi32, #tpu.memory_space<smem>>, %arg6: memref<1x8x8x8xf32, #tpu.memory_space<vmem>>, %arg7: memref<1x8x8x8xf32, #tpu.memory_space<vmem>>, %arg8: memref<1x8x8x8xf32, #tpu.memory_space<vmem>>) attributes {dimension_semantics = [#tpu.dimension_semantics<parallel>, #tpu.dimension_semantics<parallel>, #tpu.dimension_semantics<parallel>, #tpu.dimension_semantics<arbitrary>], iteration_bounds = array<i64: 2, 1, 1, 2>, scalar_prefetch = 2 : i64, scratch_operands = 0 : i64, tpu.core_type = #tpu.core_type<tc>, window_params = [{transform_indices = @transform_0, window_bounds = array<i64: 1, 8, 8, 8>}, {transform_indices = @transform_1, window_bounds = array<i64: 1, 8, 8, 8>}, {transform_indices = @transform_2, window_bounds = array<i64: 1, 8, 8, 8>}]} {
    %c0 = arith.constant 0 : index
    %c0_0 = arith.constant 0 : index
    %c0_1 = arith.constant 0 : index
    %c0_2 = arith.constant 0 : index
    %0 = vector.load %arg6[%c0, %c0_0, %c0_1, %c0_2] : memref<1x8x8x8xf32, #tpu.memory_space<vmem>>, vector<1x8x8x8xf32>
    %1 = vector.shape_cast %0 : vector<1x8x8x8xf32> to vector<8x8x8xf32>
    %c0_3 = arith.constant 0 : index
    %c0_4 = arith.constant 0 : index
    %c0_5 = arith.constant 0 : index
    %c0_6 = arith.constant 0 : index
    %2 = vector.load %arg7[%c0_3, %c0_4, %c0_5, %c0_6] : memref<1x8x8x8xf32, #tpu.memory_space<vmem>>, vector<1x8x8x8xf32>
    %3 = vector.shape_cast %2 : vector<1x8x8x8xf32> to vector<8x8x8xf32>
    %c0_i32 = arith.constant 0 : i32
    %4 = arith.cmpi eq, %arg3, %c0_i32 : i32
    %5 = arith.extui %4 : i1 to i32
    %c0_i32_7 = arith.constant 0 : i32
    %6 = arith.cmpi ne, %5, %c0_i32_7 : i32
    scf.if %6 {
      %10 = tpu.transpose %3, [0, 2, 1] : vector<8x8x8xf32> -> vector<8x8x8xf32>
      %11 = arith.addf %1, %10 : vector<8x8x8xf32>
      %12 = tpu.transpose %11, [1, 2, 0] : vector<8x8x8xf32> -> vector<8x8x8xf32>
      %c0_9 = arith.constant 0 : index
      %c0_10 = arith.constant 0 : index
      %c0_11 = arith.constant 0 : index
      %c0_12 = arith.constant 0 : index
      %13 = vector.load %arg8[%c0_9, %c0_10, %c0_11, %c0_12] : memref<1x8x8x8xf32, #tpu.memory_space<vmem>>, vector<1x8x8x8xf32>
      %14 = vector.shape_cast %13 : vector<1x8x8x8xf32> to vector<8x8x8xf32>
      %15 = vector.shape_cast %12 : vector<8x8x8xf32> to vector<1x8x8x8xf32>
      tpu.vector_store %arg8[%c0_9, %c0_10, %c0_11, %c0_12], %15 {strides = array<i32>} : memref<1x8x8x8xf32, #tpu.memory_space<vmem>>, vector<1x8x8x8xf32>,
    } else {
    }
    %c1_i32 = arith.constant 1 : i32
    %7 = arith.cmpi eq, %arg3, %c1_i32 : i32
    %8 = arith.extui %7 : i1 to i32
    %c0_i32_8 = arith.constant 0 : i32
    %9 = arith.cmpi ne, %8, %c0_i32_8 : i32
    scf.if %9 {
      %10 = tpu.transpose %1, [0, 2, 1] : vector<8x8x8xf32> -> vector<8x8x8xf32>
      %11 = arith.addf %3, %10 : vector<8x8x8xf32>
      %12 = tpu.transpose %11, [1, 2, 0] : vector<8x8x8xf32> -> vector<8x8x8xf32>
      %c0_9 = arith.constant 0 : index
      %c0_10 = arith.constant 0 : index
      %c0_11 = arith.constant 0 : index
      %c0_12 = arith.constant 0 : index
      %13 = vector.load %arg8[%c0_9, %c0_10, %c0_11, %c0_12] : memref<1x8x8x8xf32, #tpu.memory_space<vmem>>, vector<1x8x8x8xf32>
      %14 = vector.shape_cast %13 : vector<1x8x8x8xf32> to vector<8x8x8xf32>
      %15 = vector.shape_cast %12 : vector<8x8x8xf32> to vector<1x8x8x8xf32>
      tpu.vector_store %arg8[%c0_9, %c0_10, %c0_11, %c0_12], %15 {strides = array<i32>} : memref<1x8x8x8xf32, #tpu.memory_space<vmem>>, vector<1x8x8x8xf32>,
    } else {
    }
    return
  }
  func.func @transform_0(%arg0: i32, %arg1: i32, %arg2: i32, %arg3: i32, %arg4: memref<2xi32, #tpu.memory_space<smem>>, %arg5: memref<2xi32, #tpu.memory_space<smem>>) -> (i32, i32, i32, i32) {
    %c2_i32 = arith.constant 2 : i32
    %0 = arith.muli %c2_i32, %arg1 : i32
    %1 = arith.index_cast %0 : i32 to index
    %2 = memref.load %arg4[%1] : memref<2xi32, #tpu.memory_space<smem>>
    %c2_i32_0 = arith.constant 2 : i32
    %3 = arith.muli %c2_i32_0, %arg1 : i32
    %4 = arith.index_cast %3 : i32 to index
    %5 = memref.load %arg5[%4] : memref<2xi32, #tpu.memory_space<smem>>
    %c0_i32 = arith.constant 0 : i32
    return %arg0, %arg2, %2, %5 : i32, i32, i32, i32
  }
  func.func @transform_1(%arg0: i32, %arg1: i32, %arg2: i32, %arg3: i32, %arg4: memref<2xi32, #tpu.memory_space<smem>>, %arg5: memref<2xi32, #tpu.memory_space<smem>>) -> (i32, i32, i32, i32) {
    %c2_i32 = arith.constant 2 : i32
    %0 = arith.muli %c2_i32, %arg1 : i32
    %c1_i32 = arith.constant 1 : i32
    %1 = arith.addi %0, %c1_i32 : i32
    %2 = arith.index_cast %1 : i32 to index
    %3 = memref.load %arg4[%2] : memref<2xi32, #tpu.memory_space<smem>>
    %c2_i32_0 = arith.constant 2 : i32
    %4 = arith.muli %c2_i32_0, %arg1 : i32
    %c1_i32_1 = arith.constant 1 : i32
    %5 = arith.addi %4, %c1_i32_1 : i32
    %6 = arith.index_cast %5 : i32 to index
    %7 = memref.load %arg5[%6] : memref<2xi32, #tpu.memory_space<smem>>
    %c0_i32 = arith.constant 0 : i32
    return %arg0, %arg2, %3, %7 : i32, i32, i32, i32
  }
  func.func @transform_2(%arg0: i32, %arg1: i32, %arg2: i32, %arg3: i32, %arg4: memref<2xi32, #tpu.memory_space<smem>>, %arg5: memref<2xi32, #tpu.memory_space<smem>>) -> (i32, i32, i32, i32) {
    %c2_i32 = arith.constant 2 : i32
    %0 = arith.muli %c2_i32, %arg1 : i32
    %1 = arith.addi %0, %arg3 : i32
    %2 = arith.index_cast %1 : i32 to index
    %3 = memref.load %arg4[%2] : memref<2xi32, #tpu.memory_space<smem>>
    %c2_i32_0 = arith.constant 2 : i32
    %4 = arith.muli %c2_i32_0, %arg1 : i32
    %5 = arith.addi %4, %arg3 : i32
    %6 = arith.index_cast %5 : i32 to index
    %7 = memref.load %arg5[%6] : memref<2xi32, #tpu.memory_space<smem>>
    %c0_i32 = arith.constant 0 : i32
    return %arg0, %3, %7, %arg2 : i32, i32, i32, i32
  }
}

</mosaic_0001>

<bundles_post_ra>
// kernel: tpu_custom_call.1
= control target key start
LH: loop header
LB: loop body
LE: loop exit
PB: predicated region body
PF: predicated region fallthrough
CT: control target
= control target key end

     0   :  { %s3611_s0 = inlined_call_operand.hbm [shape: s32[2], index: 0, kind: input, shape index: {}]   ;;  %s3612_s2 = inlined_call_operand.hbm [shape: f32[2,8,8,8], index: 2, kind: input, shape index: {}]   ;;  %s3613_s3 = inlined_call_operand.hbm [shape: f32[2,8,8,8], index: 3, kind: input, shape index: {}]   ;;  %s3614_s4 = inlined_call_operand.hbm [shape: f32[2,8,8,8], index: 4, kind: output, shape index: {}]   ;;  %s3615_s1 = inlined_call_operand.vmem [shape: s32[2], index: 1, kind: input, shape index: {}]  }
   0x1   :  { %3633 = sst [smem:[#allocation27_spill]] %s3612_s2  ;;  %s2770_s17 = scalar_lea.hbm %s3611_s0, 16 }
   0x2   :  { %3634 = sst [smem:[#allocation28_spill]] %s3614_s4  ;;  %p2771_p0 = scmp.ne.s32.totalorder %s3611_s0, %s2770_s17 }
   0x3   :  { %p2774_p1 = scmp.lt.u32.totalorder %s2770_s17, %s3611_s0 }
   0x5   :  { %p2776_p2 = pnand %p2774_p1, %p2771_p0 }
   0x7   :  { %2779 = shalt.err (!%p2776_p2)  }
   0x8   :  { %s3006_s22 = smov [#allocation3]   ;;  %s11_s27 = sshll.u32 %s3615_s1, 4  ;;  %s12_s27 = int_to_ptr.vmem [resolvable:$true] %s11_s27 }
   0x9   :  { %10 = dma.hbm_to_smem %s3611_s0, 16, %s3006_s22, [#allocation2] }
   0xa   :  { %s2780_s28 = scalar_lea.vmem %s12_s27, 16  ;;  %p2785_p4 = scmp.lt.s32.totalorder %s12_s27, %s12_s27 }
   0xb   :  { %p2781_p3 = scmp.ne.s32.totalorder %s12_s27, %s2780_s28  ;;  %p2786_p5 = scmp.lt.s32.totalorder %s2780_s28, %s2780_s28 }
   0xd   :  { %p2787_p6 = por %p2786_p5, %p2785_p4 }
   0xf   :  { %p2788_p7 = pnand %p2787_p6, %p2781_p3 }
  0x11   :  { %2791 = shalt.err (!%p2788_p7)  }
  0x12   :  { %s3007_s29 = smov [#allocation4]  }
  0x13   :  { %14 = dma.vmem_to_smem %s12_s27, 16, %s3007_s29, [#allocation2] }
  0x14   :  { %2936 = dma.done.wait [#allocation2], 32 }
  0x15   :  { %2937 = vsyncadd [#allocation2], 4294967264 }
  0x16   :  { %16 = sfence }
  0x17   :  { %17 = vsyncpa [#allocation6], 0 }
  0x18   :  { %19 = vsyncpa [#allocation6 + $0x1], 0 }
  0x19   :  { %20 = vsyncpa [#allocation9], 0 }
  0x1a   :  { %22 = vsyncpa [#allocation9 + $0x1], 0 }
  0x1b   :  { %23 = vsyncpa [#allocation7], 0 }
  0x1c   :  { %25 = vsyncpa [#allocation7 + $0x1], 0  ;;  %s3059_s0 = smov 0   ;;  %s3061_s1 = smov 0  }
  0x1d   :  { %s3063_s30 = smov 0   ;;  %s3065_s5 = smov 0  }
  0x1e   :  { %s3067_s6 = smov 0   ;;  %s3069_s7 = smov 0  }
  0x1f   :  { %s3071_s8 = smov 0   ;;  %s3073_s9 = smov 0  }
  0x20   :  { %s3075_s10 = smov 0   ;;  %s3077_s11 = smov 0  }
  0x21   :  { %s3079_s12 = smov 0   ;;  %s3081_s13 = smov 0  }
  0x22   :  { %s3083_s14 = smov 0   ;;  %s3085_s15 = smov 0  }
  0x23 LB: > { %3635 = sst [smem:[#allocation17_spill]] %s2952_s0  ;;  %s3616_s16 = sadd.s32 4294967295, %s3004_s15   ;;  %s3004_s15 = sphi %s3085_s15, %s31_s15   ;;  %s3000_s14 = sphi %s3083_s14, %s3691_s14   ;;  %s2996_s13 = sphi %s3081_s13, %s3678_s13   ;;  %s2992_s12 = sphi %s3079_s12, %s3690_s12   ;;  %s2988_s11 = sphi %s3077_s11, %s3689_s11   ;;  %s2984_s10 = sphi %s3075_s10, %s3688_s10   ;;  %s2980_s9 = sphi %s3073_s9, %s3687_s9   ;;  %s2976_s8 = sphi %s3071_s8, %s3675_s8   ;;  %s2972_s7 = sphi %s3069_s7, %s3686_s7   ;;  %s2968_s6 = sphi %s3067_s6, %s3685_s6   ;;  %s2964_s5 = sphi %s3065_s5, %s3684_s5   ;;  %s2960_s30 = sphi %s3063_s30, %s3683_s30   ;;  %s2956_s1 = sphi %s3061_s1, %s3682_s1   ;;  %s2952_s0 = sphi %s3059_s0, %s3681_s0  }
  0x24   : > { %3636 = sst [smem:[#allocation18_spill]] %s2980_s9  ;;  %s46_s18 = sadd.s32 1, %s2996_s13 }
  0x25   : > { %3637 = sst [smem:[#allocation19_spill]] %s2988_s11  ;;  %s57_s19 = sadd.s32 1, %s3000_s14 }
  0x26   : > { %3638 = sst [smem:[#allocation20_spill]] %s2992_s12  ;;  %p47_p8 = scmp.ge.s32.totalorder %s46_s18, 2 }
  0x27   : > { %3639 = sst [smem:[#allocation21_spill]] %s2996_s13  ;;  %s3131_s20 = sld [smem:[#allocation3]] }
  0x28   : > { %s3133_s21 = sld [smem:[#allocation4]]  ;;  %s76_s22 = sadd.s32 1, %s2984_s10 }
  0x29   : > { %s3693_s18 = smov (%p47_p8, %s46_s18), 0  ;;  %s3695_s19 = smov (!%p47_p8, %s57_s19), %s3000_s14 }
  0x2a   : > { %3640 = sst [smem:[#allocation22_spill]] %s3693_s18  ;;  %p83_p9 = scmp.ne.s32.totalorder %s2984_s10, %s2980_s9 }
  0x2b   : > { %p3628_p10 = scmp.eq.s32.totalorder %s3004_s15, 0  ;;  %p59_p11 = scmp.ge.s32.totalorder %s3695_s19, 2 }
  0x2c   : > { %p89_p12 = scmp.ne.s32.totalorder %s2980_s9, %s2976_s8  ;;  %p3153_p0 = scmp.eq.s32.totalorder %s3616_s16, 0 }
  0x2d   : > { %p3145_p13 = por %p3628_p10, %p83_p9  ;;  %s3697_s19 = smov (%p59_p11, %s3695_s19), 0 }
  0x2e   : > { %3642 = sst [smem:[#allocation23_spill]] %s3697_s19  ;;  %s3159_s25 = ssub.s32 %s3000_s14, %s3697_s19 }
  0x2f   : > { %s3161_s26 = sld [smem:[#allocation3 + $0x1]]  ;;  %p3165_p1 = por %p3153_p0, %p89_p12 }
  0x30   : > { %s3169_s28 = sld [smem:[#allocation4 + $0x1]]  ;;  %p3629_p2 = scmp.eq.s32.totalorder %s3159_s25, 0 }
  0x31   : > { %s3644_s27 = scalar_select %p3165_p1, 1, 0 }
  0x32   : > { %s141_s29 = sld [smem:[#allocation3 + %s2996_s13]]  ;;  %s156_s4 = sadd.s32 1, %s2960_s30 }
  0x33   : > { %3645 = sst [smem:[#allocation24_spill]] %s3644_s27  ;;  %p166_p3 = scmp.ne.s32.totalorder %s2960_s30, %s2956_s1 }
  0x34   : > { %s142_s8 = sld [smem:[#allocation4 + %s2996_s13]]  ;;  %s3647_s12 = sadd.s32 4294967295, %s3004_s15  }
  0x35   : > { %s145_s17 = sld [smem:[#allocation3 + %s3693_s18]]  ;;  %p167_p4 = scmp.eq.s32.totalorder %s3647_s12, 3 }
  0x36   : > { %s3178_s16 = scalar_select %p3629_p2, %s2984_s10, %s76_s22  }
  0x37   : > { %s146_s19 = sld [smem:[#allocation4 + %s3693_s18]]  ;;  %p3187_p5 = por %p167_p4, %p166_p3 }
  0x38   : > { %3646 = sst [smem:[#allocation25_spill]] %s3178_s16  ;;  %p172_p6 = scmp.ne.s32.totalorder %s2956_s1, %s2952_s0 }
  0x39   : > { %s3648_s13 = scalar_select %p3187_p5, 1, 0 }
  0x3a   : > { %s3650_s16 = sadd.s32 4294967294, %s3004_s15   ;;  %p3627_p11 = scmp.lt.s32.totalorder %s3004_s15, 4 }
  0x3b   : > { %s148_s11 = ssub.s32 %s141_s29, %s145_s17  ;;  %3649 = sst [smem:[#allocation26_spill]] %s3648_s13 }
  0x3c   : > { %s149_s27 = sor.u32 %s148_s11, %s3159_s25  ;;  %p173_p7 = scmp.eq.s32.totalorder %s3650_s16, 3 }
  0x3d   : > { %s150_s9 = ssub.s32 %s142_s8, %s146_s19  ;;  %s193_s11 = sand.u32 1, %s2984_s10  }
  0x3e   : > { %s151_s22 = sor.u32 %s150_s9, %s149_s27  ;;  %p3195_p9 = por %p173_p7, %p172_p6 }
  0x3f   : > { %p154_p8 = scmp.eq.s32.totalorder %s151_s22, 0  ;;  %s205_s17 = sadd.s32 %s3133_s21, %s3131_s20 }
  0x40   : > { %s3651_s18 = scalar_select %p3195_p9, 1, 0 }
  0x41   : > { %s3201_s12 = scalar_select %p154_p8, %s2960_s30, %s156_s4  }
  0x42   : > { %s2603_s29 = sshll.u32 %s193_s11, 6  ;;  %s2604_s13 = sshll.u32 %s3000_s14, 3 }
  0x43   : > { %s208_s19 = sadd.s32 %s2604_s13, %s205_s17  ;;  %s197_s9 = scalar_lea.vmem [#allocation5], %s2603_s29 }
  0x44   : > { %s211_s27 = sshll.u32 %s197_s9, 4  ;;  %s2605_s8 = sshll.u32 %s208_s19, 7  ;;  %s3209_s27 = int_to_ptr.vmem [resolvable:$true] %s211_s27 }
  0x45   : > { %s3652_s2 = sld [smem:[#allocation27_spill]]  ;;  %p3220_p12 = pnand %p3627_p11, %p3145_p13 }
  0x46   : > { %s3225_s20 = scalar_lea.sflag [#allocation6], %s193_s11 }
  0x47   : > { %p2794_p6 = pneg %p3220_p12 }
  0x4b   : > { %s3214_s0 = scalar_lea.hbm %s3652_s2, %s2605_s8  ;;  %s2797_s29 = scalar_lea.hbm %s3652_s2, 2048 }
  0x4c   : > { %s2792_s21 = scalar_lea.hbm %s3214_s0, 1024  ;;  %p2798_p13 = scmp.lt.u32.totalorder %s3214_s0, %s3652_s2 }
  0x4d   : > { %p2793_p4 = scmp.ne.s32.totalorder %s3214_s0, %s2792_s21  ;;  %p2799_p11 = scmp.lt.u32.totalorder %s2797_s29, %s2792_s21 }
  0x4e   : > { %p2801_p2 = scmp.lt.u32.totalorder %s2792_s21, %s3214_s0 }
  0x4f   : > { %p2795_p7 = pnand %p2794_p6, %p2793_p4  ;;  %p2800_p10 = por %p2799_p11, %p2798_p13 }
  0x51   : > { %p2796_p8 = pneg %p2795_p7  ;;  %p2802_p3 = por %p2801_p2, %p2800_p10 }
  0x53   : > { %p2803_p9 = pnand %p2802_p3, %p2796_p8 }
  0x55   : > { %2806 = shalt.err (!%p2803_p9)
}
  0x56   : > { %s2807_s11 = scalar_lea.vmem %s3209_s27, 1024  ;;  %s3008_s8 = smov [#allocation5]  }
  0x57   : > { %p2808_p4 = scmp.ne.s32.totalorder %s3209_s27, %s2807_s11  ;;  %s2812_s16 = sshll.u32 %s3008_s8, 4  ;;  %s2813_s16 = int_to_ptr.vmem [resolvable:$false] %s2812_s16 }
  0x58   : > { %s2814_s22 = scalar_lea.vmem %s2813_s16, 2048  ;;  %p2815_p1 = scmp.lt.s32.totalorder %s3209_s27, %s2813_s16 }
  0x59   : > { %p2810_p7 = pnand %p2808_p4, %p2794_p6  ;;  %p2816_p11 = scmp.lt.s32.totalorder %s2814_s22, %s2807_s11 }
  0x5b   : > { %p2811_p5 = pneg %p2810_p7  ;;  %p2817_p13 = por %p2816_p11, %p2815_p1 }
  0x5d   : > { %p2818_p10 = pnand %p2817_p13, %p2811_p5 }
  0x5f   : > { %2821 = shalt.err (!%p2818_p10)
}
  0x60   : > { %s3009_s21 = smov 128   ;;  %s3010_s23 = smov 8  }
  0x61   : > { %2636 = dma.hbm_to_vmem [thread:$0]  (!%p3220_p12), %s3214_s0, 1024, %s3209_s27, %s3225_s20, %s3009_s21, %s3009_s21, %s3010_s23  }
  0x62   : > { %p248_p1 = scmp.lt.s32.totalorder %s3004_s15, 5  ;;  %p3654_p2 = scmp.ge.s32.totalorder %s3004_s15, 1 }
  0x63   : > { %s116_s29 = sadd.s32 1, %s2972_s7  ;;  %p123_p9 = scmp.ne.s32.totalorder %s2972_s7, %s2968_s6 }
  0x64   : > { %p3259_p5 = pnand %p3654_p2, %p248_p1  ;;  %p3656_p3 = scmp.eq.s32.totalorder %s3159_s25, 0 }
  0x65   : > { %p3657_p6 = scmp.eq.s32.totalorder %s3004_s15, 0  ;;  %p129_p4 = scmp.ne.s32.totalorder %s2968_s6, %s2964_s5 }
  0x66   : > { %s3269_s19 = scalar_select %p3656_p3, %s2972_s7, %s116_s29  }
  0x67   : > { %p125_p8 = por %p123_p9, %p3657_p6  ;;  %s221_s4 = sand.u32 1, %s2972_s7  }
  0x68   : > { %s234_s9 = sadd.s32 %s3169_s28, %s3161_s26  ;;  %p3280_p7 = por %p129_p4, %p3153_p0 }
  0x69   : > { %s2606_s27 = sshll.u32 %s221_s4, 6  ;;  %s237_s20 = sadd.s32 %s2604_s13, %s234_s9 }
  0x6a   : > { %s3658_s0 = scalar_select %p3280_p7, 1, 0 }
  0x6b   : > { %s2610_s11 = sshll.u32 %s237_s20, 7  ;;  %s225_s5 = scalar_lea.vmem [#allocation8], %s2606_s27 }
  0x6c   : > { %s3289_s25 = scalar_lea.hbm %s3613_s3, %s2610_s11  ;;  %s240_s26 = sshll.u32 %s225_s5, 4  ;;  %s3291_s26 = int_to_ptr.vmem [resolvable:$true] %s240_s26 }
  0x6d   : > { %p3659_p0 = scmp.lt.s32.totalorder %s3004_s15, 4  ;;  %s3299_s13 = scalar_lea.sflag [#allocation9], %s221_s4 }
  0x6e   : > { %s2822_s28 = scalar_lea.hbm %s3289_s25, 1024  ;;  %s2827_s9 = scalar_lea.hbm %s3613_s3, 2048 }
  0x6f   : > { %p3295_p12 = pnand %p3659_p0, %p125_p8  ;;  %p2823_p11 = scmp.ne.s32.totalorder %s3289_s25, %s2822_s28 }
  0x70   : > { %p2828_p2 = scmp.lt.u32.totalorder %s3289_s25, %s3613_s3  ;;  %p2829_p9 = scmp.lt.u32.totalorder %s2827_s9, %s2822_s28 }
  0x71   : > { %p2824_p13 = pneg %p3295_p12  ;;  %p2831_p6 = scmp.lt.u32.totalorder %s2822_s28, %s3289_s25 }
  0x72   : > { %p2830_p3 = por %p2829_p9, %p2828_p2 }
  0x73   : > { %p2825_p10 = pnand %p2824_p13, %p2823_p11 }
  0x74   : > { %p2832_p8 = por %p2831_p6, %p2830_p3 }
  0x75   : > { %p2826_p1 = pneg %p2825_p10 }
  0x77   : > { %p2833_p4 = pnand %p2832_p8, %p2826_p1 }
  0x79   : > { %2836 = shalt.err (!%p2833_p4)
}
  0x7a   : > { %s2837_s4 = scalar_lea.vmem %s3291_s26, 1024  ;;  %s3011_s11 = smov [#allocation8]  }
  0x7b   : > { %p2838_p0 = scmp.ne.s32.totalorder %s3291_s26, %s2837_s4  ;;  %s2842_s8 = sshll.u32 %s3011_s11, 4  ;;  %s2843_s8 = int_to_ptr.vmem [resolvable:$false] %s2842_s8 }
  0x7c   : > { %s2844_s16 = scalar_lea.vmem %s2843_s8, 2048  ;;  %p2845_p7 = scmp.lt.s32.totalorder %s3291_s26, %s2843_s8 }
  0x7d   : > { %p2840_p11 = pnand %p2838_p0, %p2824_p13  ;;  %p2846_p2 = scmp.lt.s32.totalorder %s2844_s16, %s2837_s4 }
  0x7f   : > { %p2841_p10 = pneg %p2840_p11  ;;  %p2847_p9 = por %p2846_p2, %p2845_p7 }
  0x81   : > { %p2848_p3 = pnand %p2847_p9, %p2841_p10 }
  0x83   : > { %2851 = shalt.err (!%p2848_p3)
}
  0x84   : > { %2639 = dma.hbm_to_vmem [thread:$0]  (!%p3295_p12), %s3289_s25, 1024, %s3291_s26, %s3299_s13, %s3009_s21, %s3009_s21, %s3010_s23  }
  0x85   : > { %252 = sbr.rel (%p3259_p5) target bundleno = 1080 (0x438), region = 28  ;;  %s3661_s5 = sld [smem:[#allocation18_spill]] (!%p3259_p5) }
  0x86   : > { %s3662_s28 = sld [smem:[#allocation24_spill]] (!%p3259_p5) }
  0x8b   : > { %s254_s22 = sand.u32 (!%p3259_p5), 1, %s3661_s5  }
  0x8c   : > { %s2612_s29 = sshll.u32 %s254_s22, 6  ;;  %s255_s9 = scalar_lea.sflag [#allocation6], %s254_s22 }
  0x8d   : > { %s258_s27 = scalar_lea.vmem [#allocation5], %s2612_s29  ;;  %p3663_p7 = scmp.ne.s32.totalorder %s3662_s28, 0 }
  0x8f   : > { %2939 = dma.done.wait (%p3663_p7), %s255_s9, 1024  }
  0x90   : > { %2941 = vsyncadd (%p3663_p7), %s255_s9, 4294966272  ;;  %s263_s24 = sand.u32 1, %s2968_s6   ;;  %p3664_p12 = scmp.ne.s32.totalorder %s3658_s0, 0 }
  0x91   : > { %s2613_s20 = sshll.u32 %s263_s24, 6  ;;  %s264_s4 = scalar_lea.sflag [#allocation9], %s263_s24 }
  0x92   : > { %s267_s21 = scalar_lea.vmem [#allocation8], %s2613_s20 }
  0x93   : > { %2943 = dma.done.wait (%p3664_p12), %s264_s4, 1024  }
  0x94   : > { %2945 = vsyncadd (%p3664_p12), %s264_s4, 4294966272  ;;  %s290_s23 = sand.u32 1, %s2956_s1   ;;  %v3345_v0 = vld [vmem:[%s258_s27] sm:$0xff]  ;;  %v3347_v1 = vld [vmem:[%s258_s27 + $0x8] sm:$0xff]  ;;  %s3665_s25 = sld [smem:[#allocation19_spill]] }
  0x95   : > { %s2614_s17 = sshll.u32 %s290_s23, 6  ;;  %v3349_v2 = vld [vmem:[%s258_s27 + $0x10] sm:$0xff]  ;;  %v3351_v3 = vld [vmem:[%s258_s27 + $0x18] sm:$0xff]  ;;  %v3353_v4 = vld [vmem:[%s258_s27 + $0x20] sm:$0xff] }
  0x96   : > { %v3355_v5 = vld [vmem:[%s258_s27 + $0x28] sm:$0xff]  ;;  %v3357_v6 = vld [vmem:[%s258_s27 + $0x30] sm:$0xff]  ;;  %v3359_v7 = vld [vmem:[%s258_s27 + $0x38] sm:$0xff]  ;;  %s3377_s0 = scalar_lea.vmem [#allocation10], %s2614_s17 }
  0x97   : > { %v3361_v8 = vld [vmem:[%s267_s21] sm:$0xff]  ;;  %v3363_v9 = vld [vmem:[%s267_s21 + $0x8] sm:$0xff]  ;;  %v3365_v10 = vld [vmem:[%s267_s21 + $0x10] sm:$0xff] }
  0x98   : > { %v3367_v11 = vld [vmem:[%s267_s21 + $0x18] sm:$0xff]  ;;  %v3369_v12 = vld [vmem:[%s267_s21 + $0x20] sm:$0xff]  ;;  %v3371_v13 = vld [vmem:[%s267_s21 + $0x28] sm:$0xff] }
  0x99   : > { %v3373_v14 = vld [vmem:[%s267_s21 + $0x30] sm:$0xff]  ;;  %v3375_v15 = vld [vmem:[%s267_s21 + $0x38] sm:$0xff] }
  0x9a   : > { %p2615_p5 = scmp.ne.s32.totalorder %s3665_s25, 0 }
  0x9b   : > { %327 = vxpose.xlu0.b32.start.end [1/1] (short) (narrow) (!%p2615_p5), %v3361_v8, 8  ;;  %391 = vxpose.xlu1.b32.start.end [1/1] (short) (narrow) (!%p2615_p5), %v3365_v10, 8  ;;  %v3012_v35 = vmov (!%p2615_p5), 1983009808   ;;  %v852_v37 = vlaneseq (!%p2615_p5)  ;;  %v3013_v42 = vmov (!%p2615_p5), 1934713408  }
  0x9c   : > { %326 = sbr.rel (%p2615_p5) target bundleno = 596 (0x254), region = 40  ;;  %v850_v36 = vunpack.c.l.s4 (!%p2615_p5), %v3012_v35  ;;  %v914_v43 = vunpack.c.l.s4 (!%p2615_p5), %v3013_v42  ;;  %vm1375_vm0 = vcmask (!%p2615_p5), 64512  }
  0x9d   : > { %v853_v41 = vshrl.u32 (!%p2615_p5), %v852_v37, 7 }
  0x9e   : > { %v851_v40 = vunpack.c.0.s8 (!%p2615_p5), %v850_v36  ;;  %v915_v49 = vunpack.c.0.s8 (!%p2615_p5), %v914_v43 }
  0x9f   : > { %359 = vxpose.xlu0.b32.start.end [1/1] (short) (narrow) (!%p2615_p5), %v3363_v9, 8  ;;  %423 = vxpose.xlu1.b32.start.end [1/1] (short) (narrow) (!%p2615_p5), %v3367_v11, 8 }
  0xa0   : > { %v3396_v48 = vsub.s32 (!%p2615_p5), %v851_v40, %v853_v41  ;;  %v3400_v57 = vsub.s32 (!%p2615_p5), %v915_v49, %v853_v41 }
  0xa3   : > { %455 = vxpose.xlu0.b32.start.end [1/1] (short) (narrow) %v3369_v12, 8  ;;  %487 = vxpose.xlu1.b32.start.end [1/1] (short) (narrow) %v3371_v13, 8 }
  0xa7   : > { %519 = vxpose.xlu0.b32.start.end [1/1] (short) (narrow) %v3373_v14, 8  ;;  %551 = vxpose.xlu1.b32.start.end [1/1] (short) (narrow) %v3375_v15, 8 }
 0x11b   : > { %v343_v16 = vpop.trf.xlu0  ;;  %v407_v17 = vpop.trf.xlu1 }
 0x11c   : > { %v583_v18 = vadd.f32 %v343_v16, %v3345_v0  ;;  %v585_v19 = vadd.f32 %v407_v17, %v3349_v2 }
 0x11e   : > { %591 = vxpose.xlu0.b32.start.end [1/1] (short) (narrow) %v583_v18, 8 }
 0x11f   : > { %v375_v20 = vpop.trf.xlu0  ;;  %v439_v21 = vpop.trf.xlu1 }
 0x120   : > { %v584_v22 = vadd.f32 %v375_v20, %v3347_v1  ;;  %v586_v23 = vadd.f32 %v439_v21, %v3351_v3 }
 0x122   : > { %655 = vxpose.xlu0.b32.start.end [1/1] (short) (narrow) %v585_v19, 8  ;;  %623 = vxpose.xlu1.b32.start.end [1/1] (short) (narrow) %v584_v22, 8 }
 0x123   : > { %v471_v24 = vpop.trf.xlu0  ;;  %v503_v25 = vpop.trf.xlu1 }
 0x124   : > { %v587_v26 = vadd.f32 %v471_v24, %v3353_v4  ;;  %v588_v27 = vadd.f32 %v503_v25, %v3355_v5 }
 0x126   : > { %687 = vxpose.xlu1.b32.start.end [1/1] (short) (narrow) %v586_v23, 8  ;;  %719 = vxpose.xlu0.b32.start.end [1/1] (short) (narrow) %v587_v26, 8 }
 0x127   : > { %v535_v28 = vpop.trf.xlu0  ;;  %v567_v29 = vpop.trf.xlu1 }
 0x128   : > { %v589_v30 = vadd.f32 %v535_v28, %v3357_v6  ;;  %v590_v31 = vadd.f32 %v567_v29, %v3359_v7 }
 0x12a   : > { %751 = vxpose.xlu1.b32.start.end [1/1] (short) (narrow) %v588_v27, 8  ;;  %783 = vxpose.xlu0.b32.start.end [1/1] (short) (narrow) %v589_v30, 8 }
 0x12e   : > { %815 = vxpose.xlu1.b32.start.end [1/1] (short) (narrow) %v590_v31, 8 }
 0x19e   : > { %v607_v32 = vpop.trf.xlu0 }
 0x1a2   : > { %v639_v33 = vpop.trf.xlu1  ;;  %v671_v34 = vpop.trf.xlu0 }
 0x1a3   : > { %v847_v47 = vcombine.low %v607_v32, %v671_v34  ;;  %v848_v62 = vcombine.high %v607_v32, %v671_v34 }
 0x1a5   : > { %v855_v53 = vrot.slane %v847_v47, %v3396_v48  ;;  %v862_v23 = vrot.slane %v848_v62, %v3396_v48 }
 0x1a6   : > { %v703_v38 = vpop.trf.xlu1  ;;  %v735_v39 = vpop.trf.xlu0 }
 0x1a7   : > { %v863_v44 = vcombine.low %v639_v33, %v703_v38  ;;  %v864_v56 = vcombine.high %v639_v33, %v703_v38 }
 0x1a9   : > { %v871_v50 = vrot.slane %v863_v44, %v3396_v48  ;;  %v878_v18 = vrot.slane %v864_v56, %v3396_v48 }
 0x1aa   : > { %v767_v45 = vpop.trf.xlu1  ;;  %v799_v46 = vpop.trf.xlu0 }
 0x1ab   : > { %v879_v51 = vcombine.low %v735_v39, %v799_v46  ;;  %v880_v58 = vcombine.high %v735_v39, %v799_v46  ;;  %v911_v61 = vcombine.low %v855_v53, %v871_v50  ;;  %v912_v22 = vcombine.high %v855_v53, %v871_v50 }
 0x1ac   : > { %v927_v29 = vcombine.low %v862_v23, %v878_v18  ;;  %v928_v35 = vcombine.high %v862_v23, %v878_v18 }
 0x1ad   : > { %v887_v59 = vrot.slane %v879_v51, %v3396_v48  ;;  %v894_v19 = vrot.slane %v880_v58, %v3396_v48  ;;  %v919_v20 = vrot.slane %v911_v61, %v3400_v57  ;;  %v926_v28 = vrot.slane %v912_v22, %v3400_v57 }
 0x1ae   : > { %v831_v52 = vpop.trf.xlu1  ;;  %v935_v34 = vrot.slane %v927_v29, %v3400_v57  ;;  %v942_v39 = vrot.slane %v928_v35, %v3400_v57 }
 0x1af   : > { %v895_v54 = vcombine.low %v767_v45, %v831_v52  ;;  %v896_v55 = vcombine.high %v767_v45, %v831_v52 }
 0x1b1   : > { %v903_v60 = vrot.slane %v895_v54, %v3396_v48  ;;  %v910_v63 = vrot.slane %v896_v55, %v3396_v48 }
 0x1b3   : > { %v943_v16 = vcombine.low %v887_v59, %v903_v60  ;;  %v944_v17 = vcombine.high %v887_v59, %v903_v60  ;;  %v959_v27 = vcombine.low %v894_v19, %v910_v63  ;;  %v960_v33 = vcombine.high %v894_v19, %v910_v63 }
 0x1b5   : > { %v951_v21 = vrot.slane %v943_v16, %v3400_v57  ;;  %v958_v26 = vrot.slane %v944_v17, %v3400_v57  ;;  %v967_v32 = vrot.slane %v959_v27, %v3400_v57  ;;  %v974_v38 = vrot.slane %v960_v33, %v3400_v57 }
 0x1b7   : > { %v976_v24 = vcombine.high %v919_v20, %v951_v21  ;;  %v975_v25 = vcombine.low %v919_v20, %v951_v21  ;;  %v978_v30 = vcombine.high %v926_v28, %v958_v26  ;;  %v977_v31 = vcombine.low %v926_v28, %v958_v26 }
 0x1b8   : > { %v980_v36 = vcombine.high %v935_v34, %v967_v32  ;;  %v979_v37 = vcombine.low %v935_v34, %v967_v32  ;;  %v982_v40 = vcombine.high %v942_v39, %v974_v38  ;;  %v981_v41 = vcombine.low %v942_v39, %v974_v38 }
 0x1b9   : > { %1015 = vxpose.xlu1.b32.start.end [1/1] (short) (narrow) %v976_v24, 8  ;;  %983 = vxpose.xlu0.b32.start.end [1/1] (short) (narrow) %v975_v25, 8 }
 0x1bd   : > { %1079 = vxpose.xlu1.b32.start.end [1/1] (short) (narrow) %v978_v30, 8  ;;  %1047 = vxpose.xlu0.b32.start.end [1/1] (short) (narrow) %v977_v31, 8 }
 0x1c1   : > { %1143 = vxpose.xlu1.b32.start.end [1/1] (short) (narrow) %v980_v36, 8  ;;  %1111 = vxpose.xlu0.b32.start.end [1/1] (short) (narrow) %v979_v37, 8 }
 0x1c5   : > { %1207 = vxpose.xlu1.b32.start.end [1/1] (short) (narrow) %v982_v40, 8  ;;  %1175 = vxpose.xlu0.b32.start.end [1/1] (short) (narrow) %v981_v41, 8 }
 0x239   : > { %v1031_v42 = vpop.trf.xlu1  ;;  %v999_v43 = vpop.trf.xlu0 }
 0x23d   : > { %v1095_v44 = vpop.trf.xlu1  ;;  %v1063_v45 = vpop.trf.xlu0 }
 0x23e   : > { %v1255_v46 = vcombine.low %v1031_v42, %v1095_v44  ;;  %v1239_v47 = vcombine.low %v999_v43, %v1063_v45  ;;  %v1256_v49 = vcombine.high %v1031_v42, %v1095_v44  ;;  %v1240_v50 = vcombine.high %v999_v43, %v1063_v45 }
 0x240   : > { %v1263_v53 = vrot.slane %v1255_v46, %v3396_v48  ;;  %v1247_v54 = vrot.slane %v1239_v47, %v3396_v48  ;;  %v1270_v55 = vrot.slane %v1256_v49, %v3396_v48  ;;  %v1254_v56 = vrot.slane %v1240_v50, %v3396_v48 }
 0x241   : > { %v1159_v51 = vpop.trf.xlu1  ;;  %v1127_v52 = vpop.trf.xlu0 }
 0x242   : > { %v1303_v16 = vcombine.low %v1247_v54, %v1263_v53  ;;  %v1304_v17 = vcombine.high %v1247_v54, %v1263_v53  ;;  %v1319_v22 = vcombine.low %v1254_v56, %v1270_v55  ;;  %v1320_v23 = vcombine.high %v1254_v56, %v1270_v55 }
 0x244   : > { %v1311_v28 = vrot.slane %v1303_v16, %v3400_v57  ;;  %v1318_v29 = vrot.slane %v1304_v17, %v3400_v57  ;;  %v1327_v33 = vrot.slane %v1319_v22, %v3400_v57  ;;  %v1334_v34 = vrot.slane %v1320_v23, %v3400_v57 }
 0x245   : > { %v1223_v58 = vpop.trf.xlu1  ;;  %v1191_v59 = vpop.trf.xlu0 }
 0x246   : > { %v1287_v60 = vcombine.low %v1159_v51, %v1223_v58  ;;  %v1288_v61 = vcombine.high %v1159_v51, %v1223_v58  ;;  %v1271_v62 = vcombine.low %v1127_v52, %v1191_v59  ;;  %v1272_v63 = vcombine.high %v1127_v52, %v1191_v59 }
 0x248   : > { %v1295_v18 = vrot.slane %v1287_v60, %v3396_v48  ;;  %v1302_v19 = vrot.slane %v1288_v61, %v3396_v48  ;;  %v1279_v20 = vrot.slane %v1271_v62, %v3396_v48  ;;  %v1286_v21 = vrot.slane %v1272_v63, %v3396_v48 }
 0x24a   : > { %v1335_v24 = vcombine.low %v1279_v20, %v1295_v18  ;;  %v1336_v25 = vcombine.high %v1279_v20, %v1295_v18  ;;  %v1351_v26 = vcombine.low %v1286_v21, %v1302_v19  ;;  %v1352_v27 = vcombine.high %v1286_v21, %v1302_v19 }
 0x24c   : > { %v1343_v30 = vrot.slane %v1335_v24, %v3400_v57  ;;  %v1350_v31 = vrot.slane %v1336_v25, %v3400_v57  ;;  %v1359_v32 = vrot.slane %v1351_v26, %v3400_v57  ;;  %v1366_v48 = vrot.slane %v1352_v27, %v3400_v57 }
 0x24e   : > { %v1367_v35 = vcombine.low %v1311_v28, %v1343_v30  ;;  %v1368_v36 = vcombine.high %v1311_v28, %v1343_v30  ;;  %v1369_v37 = vcombine.low %v1318_v29, %v1350_v31  ;;  %v1370_v38 = vcombine.high %v1318_v29, %v1350_v31 }
 0x24f   : > { %v1371_v39 = vcombine.low %v1327_v33, %v1359_v32  ;;  %v1372_v40 = vcombine.high %v1327_v33, %v1359_v32  ;;  %v1373_v41 = vcombine.low %v1334_v34, %v1366_v48  ;;  %v1374_v42 = vcombine.high %v1334_v34, %v1366_v48 }
 0x250   : > { %1376 = vst.msk [vmem:[%s3377_s0] sm:$0xff] %vm1375_vm0, %v1367_v35  ;;  %1377 = vst.msk [vmem:[%s3377_s0 + $0x8] sm:$0xff] %vm1375_vm0, %v1368_v36 }
 0x251   : > { %1378 = vst.msk [vmem:[%s3377_s0 + $0x10] sm:$0xff] %vm1375_vm0, %v1369_v37  ;;  %1379 = vst.msk [vmem:[%s3377_s0 + $0x18] sm:$0xff] %vm1375_vm0, %v1370_v38 }
 0x252   : > { %1380 = vst.msk [vmem:[%s3377_s0 + $0x20] sm:$0xff] %vm1375_vm0, %v1371_v39  ;;  %1381 = vst.msk [vmem:[%s3377_s0 + $0x28] sm:$0xff] %vm1375_vm0, %v1372_v40 }
 0x253   : > { %1382 = vst.msk [vmem:[%s3377_s0 + $0x30] sm:$0xff] %vm1375_vm0, %v1373_v41  ;;  %1383 = vst.msk [vmem:[%s3377_s0 + $0x38] sm:$0xff] %vm1375_vm0, %v1374_v42 }
 0x254 PF: > { %s3666_s26 = sld [smem:[#allocation19_spill]] }
 0x25a   : > { %p2616_p13 = scmp.ne.s32.totalorder %s3666_s26, 1 }
 0x25b   : > { %1388 = vxpose.xlu0.b32.start.end [1/1] (short) (narrow) (!%p2616_p13), %v3345_v0, 8  ;;  %1452 = vxpose.xlu1.b32.start.end [1/1] (short) (narrow) (!%p2616_p13), %v3349_v2, 8  ;;  %v3014_v50 = vmov (!%p2616_p13), 1983009808   ;;  %v1913_v52 = vlaneseq (!%p2616_p13)  ;;  %vm2436_vm1 = vcmask (!%p2616_p13), 64512  }
 0x25c   : > { %1387 = sbr.rel (%p2616_p13) target bundleno = 1044 (0x414), region = 44  ;;  %v1911_v51 = vunpack.c.l.s4 (!%p2616_p13), %v3014_v50 }
 0x25d   : > { %v1914_v55 = vshrl.u32 (!%p2616_p13), %v1913_v52, 7 }
 0x25e   : > { %v1912_v54 = vunpack.c.0.s8 (!%p2616_p13), %v1911_v51 }
 0x25f   : > { %1420 = vxpose.xlu0.b32.start.end [1/1] (short) (narrow) (!%p2616_p13), %v3347_v1, 8  ;;  %1484 = vxpose.xlu1.b32.start.end [1/1] (short) (narrow) (!%p2616_p13), %v3351_v3, 8 }
 0x260   : > { %v3465_v61 = vsub.s32 (!%p2616_p13), %v1912_v54, %v1914_v55 }
 0x263   : > { %1516 = vxpose.xlu0.b32.start.end [1/1] (short) (narrow) %v3353_v4, 8  ;;  %1548 = vxpose.xlu1.b32.start.end [1/1] (short) (narrow) %v3355_v5, 8 }
 0x267   : > { %1580 = vxpose.xlu0.b32.start.end [1/1] (short) (narrow) %v3357_v6, 8  ;;  %1612 = vxpose.xlu1.b32.start.end [1/1] (short) (narrow) %v3359_v7, 8 }
 0x2db   : > { %v1404_v57 = vpop.trf.xlu0  ;;  %v1468_v43 = vpop.trf.xlu1 }
 0x2dc   : > { %v1644_v44 = vadd.f32 %v1404_v57, %v3361_v8  ;;  %v1646_v0 = vadd.f32 %v1468_v43, %v3365_v10 }
 0x2de   : > { %1652 = vxpose.xlu0.b32.start.end [1/1] (short) (narrow) %v1644_v44, 8 }
 0x2df   : > { %v1436_v2 = vpop.trf.xlu0  ;;  %v1500_v45 = vpop.trf.xlu1 }
 0x2e0   : > { %v1645_v1 = vadd.f32 %v1436_v2, %v3363_v9  ;;  %v1647_v3 = vadd.f32 %v1500_v45, %v3367_v11 }
 0x2e2   : > { %1716 = vxpose.xlu0.b32.start.end [1/1] (short) (narrow) %v1646_v0, 8  ;;  %1684 = vxpose.xlu1.b32.start.end [1/1] (short) (narrow) %v1645_v1, 8 }
 0x2e3   : > { %v1532_v4 = vpop.trf.xlu0  ;;  %v1564_v5 = vpop.trf.xlu1 }
 0x2e4   : > { %v1648_v6 = vadd.f32 %v1532_v4, %v3369_v12  ;;  %v1649_v7 = vadd.f32 %v1564_v5, %v3371_v13  ;;  %v3015_v13 = vmov 1934713408  }
 0x2e5   : > { %v1975_v56 = vunpack.c.l.s4 %v3015_v13 }
 0x2e6   : > { %1748 = vxpose.xlu1.b32.start.end [1/1] (short) (narrow) %v1647_v3, 8  ;;  %1780 = vxpose.xlu0.b32.start.end [1/1] (short) (narrow) %v1648_v6, 8 }
 0x2e7   : > { %v1596_v8 = vpop.trf.xlu0  ;;  %v1628_v46 = vpop.trf.xlu1 }
 0x2e8   : > { %v1650_v10 = vadd.f32 %v1596_v8, %v3373_v14  ;;  %v1651_v9 = vadd.f32 %v1628_v46, %v3375_v15  ;;  %v1976_v15 = vunpack.c.0.s8 %v1975_v56 }
 0x2ea   : > { %1812 = vxpose.xlu1.b32.start.end [1/1] (short) (narrow) %v1649_v7, 8  ;;  %1844 = vxpose.xlu0.b32.start.end [1/1] (short) (narrow) %v1650_v10, 8  ;;  %v3469_v21 = vsub.s32 %v1976_v15, %v1914_v55 }
 0x2ee   : > { %1876 = vxpose.xlu1.b32.start.end [1/1] (short) (narrow) %v1651_v9, 8 }
 0x35e   : > { %v1668_v47 = vpop.trf.xlu0 }
 0x362   : > { %v1700_v49 = vpop.trf.xlu1  ;;  %v1732_v11 = vpop.trf.xlu0 }
 0x363   : > { %v1908_v60 = vcombine.low %v1668_v47, %v1732_v11  ;;  %v1909_v26 = vcombine.high %v1668_v47, %v1732_v11 }
 0x365   : > { %v1916_v17 = vrot.slane %v1908_v60, %v3465_v61  ;;  %v1923_v34 = vrot.slane %v1909_v26, %v3465_v61 }
 0x366   : > { %v1764_v12 = vpop.trf.xlu1  ;;  %v1796_v53 = vpop.trf.xlu0 }
 0x367   : > { %v1924_v58 = vcombine.low %v1700_v49, %v1764_v12  ;;  %v1925_v20 = vcombine.high %v1700_v49, %v1764_v12 }
 0x369   : > { %v1932_v62 = vrot.slane %v1924_v58, %v3465_v61  ;;  %v1939_v30 = vrot.slane %v1925_v20, %v3465_v61 }
 0x36a   : > { %v1828_v59 = vpop.trf.xlu1  ;;  %v1860_v14 = vpop.trf.xlu0 }
 0x36b   : > { %v1940_v63 = vcombine.low %v1796_v53, %v1860_v14  ;;  %v1941_v22 = vcombine.high %v1796_v53, %v1860_v14  ;;  %v1972_v25 = vcombine.low %v1916_v17, %v1932_v62  ;;  %v1973_v33 = vcombine.high %v1916_v17, %v1932_v62 }
 0x36c   : > { %v1988_v40 = vcombine.low %v1923_v34, %v1939_v30  ;;  %v1989_v0 = vcombine.high %v1923_v34, %v1939_v30 }
 0x36d   : > { %v1948_v23 = vrot.slane %v1940_v63, %v3465_v61  ;;  %v1955_v31 = vrot.slane %v1941_v22, %v3465_v61  ;;  %v1980_v32 = vrot.slane %v1972_v25, %v3469_v21  ;;  %v1987_v39 = vrot.slane %v1973_v33, %v3469_v21 }
 0x36e   : > { %v1892_v16 = vpop.trf.xlu1  ;;  %v1996_v44 = vrot.slane %v1988_v40, %v3469_v21  ;;  %v2003_v3 = vrot.slane %v1989_v0, %v3469_v21 }
 0x36f   : > { %v1956_v18 = vcombine.low %v1828_v59, %v1892_v16  ;;  %v1957_v19 = vcombine.high %v1828_v59, %v1892_v16 }
 0x371   : > { %v1964_v24 = vrot.slane %v1956_v18, %v3465_v61  ;;  %v1971_v27 = vrot.slane %v1957_v19, %v3465_v61 }
 0x373   : > { %v2004_v28 = vcombine.low %v1948_v23, %v1964_v24  ;;  %v2005_v29 = vcombine.high %v1948_v23, %v1964_v24  ;;  %v2020_v38 = vcombine.low %v1955_v31, %v1971_v27  ;;  %v2021_v43 = vcombine.high %v1955_v31, %v1971_v27 }
 0x375   : > { %v2012_v48 = vrot.slane %v2004_v28, %v3469_v21  ;;  %v2019_v37 = vrot.slane %v2005_v29, %v3469_v21  ;;  %v2028_v57 = vrot.slane %v2020_v38, %v3469_v21  ;;  %v2035_v1 = vrot.slane %v2021_v43, %v3469_v21 }
 0x377   : > { %v2037_v35 = vcombine.high %v1980_v32, %v2012_v48  ;;  %v2036_v36 = vcombine.low %v1980_v32, %v2012_v48  ;;  %v2039_v41 = vcombine.high %v1987_v39, %v2019_v37  ;;  %v2038_v42 = vcombine.low %v1987_v39, %v2019_v37 }
 0x378   : > { %v2041_v2 = vcombine.high %v1996_v44, %v2028_v57  ;;  %v2040_v45 = vcombine.low %v1996_v44, %v2028_v57  ;;  %v2043_v4 = vcombine.high %v2003_v3, %v2035_v1  ;;  %v2042_v5 = vcombine.low %v2003_v3, %v2035_v1 }
 0x379   : > { %2076 = vxpose.xlu1.b32.start.end [1/1] (short) (narrow) %v2037_v35, 8  ;;  %2044 = vxpose.xlu0.b32.start.end [1/1] (short) (narrow) %v2036_v36, 8 }
 0x37d   : > { %2140 = vxpose.xlu1.b32.start.end [1/1] (short) (narrow) %v2039_v41, 8  ;;  %2108 = vxpose.xlu0.b32.start.end [1/1] (short) (narrow) %v2038_v42, 8 }
 0x381   : > { %2204 = vxpose.xlu1.b32.start.end [1/1] (short) (narrow) %v2041_v2, 8  ;;  %2172 = vxpose.xlu0.b32.start.end [1/1] (short) (narrow) %v2040_v45, 8 }
 0x385   : > { %2268 = vxpose.xlu1.b32.start.end [1/1] (short) (narrow) %v2043_v4, 8  ;;  %2236 = vxpose.xlu0.b32.start.end [1/1] (short) (narrow) %v2042_v5, 8 }
 0x3f9   : > { %v2092_v6 = vpop.trf.xlu1  ;;  %v2060_v7 = vpop.trf.xlu0 }
 0x3fd   : > { %v2156_v8 = vpop.trf.xlu1  ;;  %v2124_v46 = vpop.trf.xlu0 }
 0x3fe   : > { %v2316_v10 = vcombine.low %v2092_v6, %v2156_v8  ;;  %v2300_v9 = vcombine.low %v2060_v7, %v2124_v46  ;;  %v2317_v47 = vcombine.high %v2092_v6, %v2156_v8  ;;  %v2301_v49 = vcombine.high %v2060_v7, %v2124_v46 }
 0x400   : > { %v2324_v51 = vrot.slane %v2316_v10, %v3465_v61  ;;  %v2308_v52 = vrot.slane %v2300_v9, %v3465_v61  ;;  %v2331_v12 = vrot.slane %v2317_v47, %v3465_v61  ;;  %v2315_v53 = vrot.slane %v2301_v49, %v3465_v61 }
 0x401   : > { %v2220_v11 = vpop.trf.xlu1  ;;  %v2188_v50 = vpop.trf.xlu0 }
 0x402   : > { %v2364_v14 = vcombine.low %v2308_v52, %v2324_v51  ;;  %v2365_v60 = vcombine.high %v2308_v52, %v2324_v51  ;;  %v2380_v17 = vcombine.low %v2315_v53, %v2331_v12  ;;  %v2381_v18 = vcombine.high %v2315_v53, %v2331_v12 }
 0x404   : > { %v2372_v24 = vrot.slane %v2364_v14, %v3469_v21  ;;  %v2379_v25 = vrot.slane %v2365_v60, %v3469_v21  ;;  %v2388_v29 = vrot.slane %v2380_v17, %v3469_v21  ;;  %v2395_v30 = vrot.slane %v2381_v18, %v3469_v21 }
 0x405   : > { %v2284_v54 = vpop.trf.xlu1  ;;  %v2252_v55 = vpop.trf.xlu0 }
 0x406   : > { %v2348_v13 = vcombine.low %v2220_v11, %v2284_v54  ;;  %v2349_v56 = vcombine.high %v2220_v11, %v2284_v54  ;;  %v2332_v58 = vcombine.low %v2188_v50, %v2252_v55  ;;  %v2333_v59 = vcombine.high %v2188_v50, %v2252_v55 }
 0x408   : > { %v2356_v15 = vrot.slane %v2348_v13, %v3465_v61  ;;  %v2363_v62 = vrot.slane %v2349_v56, %v3465_v61  ;;  %v2340_v63 = vrot.slane %v2332_v58, %v3465_v61  ;;  %v2347_v16 = vrot.slane %v2333_v59, %v3465_v61 }
 0x40a   : > { %v2396_v19 = vcombine.low %v2340_v63, %v2356_v15  ;;  %v2397_v20 = vcombine.high %v2340_v63, %v2356_v15  ;;  %v2412_v22 = vcombine.low %v2347_v16, %v2363_v62  ;;  %v2413_v23 = vcombine.high %v2347_v16, %v2363_v62 }
 0x40c   : > { %v2404_v26 = vrot.slane %v2396_v19, %v3469_v21  ;;  %v2411_v27 = vrot.slane %v2397_v20, %v3469_v21  ;;  %v2420_v28 = vrot.slane %v2412_v22, %v3469_v21  ;;  %v2427_v61 = vrot.slane %v2413_v23, %v3469_v21 }
 0x40e   : > { %v2428_v31 = vcombine.low %v2372_v24, %v2404_v26  ;;  %v2429_v32 = vcombine.high %v2372_v24, %v2404_v26  ;;  %v2430_v48 = vcombine.low %v2379_v25, %v2411_v27  ;;  %v2431_v33 = vcombine.high %v2379_v25, %v2411_v27 }
 0x40f   : > { %v2432_v34 = vcombine.low %v2388_v29, %v2420_v28  ;;  %v2433_v35 = vcombine.high %v2388_v29, %v2420_v28  ;;  %v2434_v36 = vcombine.low %v2395_v30, %v2427_v61  ;;  %v2435_v37 = vcombine.high %v2395_v30, %v2427_v61 }
 0x410   : > { %2437 = vst.msk [vmem:[%s3377_s0] sm:$0xff] %vm2436_vm1, %v2428_v31  ;;  %2438 = vst.msk [vmem:[%s3377_s0 + $0x8] sm:$0xff] %vm2436_vm1, %v2429_v32 }
 0x411   : > { %2439 = vst.msk [vmem:[%s3377_s0 + $0x10] sm:$0xff] %vm2436_vm1, %v2430_v48  ;;  %2440 = vst.msk [vmem:[%s3377_s0 + $0x18] sm:$0xff] %vm2436_vm1, %v2431_v33 }
 0x412   : > { %2441 = vst.msk [vmem:[%s3377_s0 + $0x20] sm:$0xff] %vm2436_vm1, %v2432_v34  ;;  %2442 = vst.msk [vmem:[%s3377_s0 + $0x28] sm:$0xff] %vm2436_vm1, %v2433_v35 }
 0x413   : > { %2443 = vst.msk [vmem:[%s3377_s0 + $0x30] sm:$0xff] %vm2436_vm1, %v2434_v36  ;;  %2444 = vst.msk [vmem:[%s3377_s0 + $0x38] sm:$0xff] %vm2436_vm1, %v2435_v37 }
 0x414 PF: > { %s3667_s13 = sld [smem:[#allocation26_spill]]  ;;  %s3669_s11 = sld [smem:[#allocation19_spill]] }
 0x415   : > { %s3670_s8 = sld [smem:[#allocation20_spill]]  ;;  %s2467_s29 = sshll.u32 %s3377_s0, 4  ;;  %s3526_s29 = int_to_ptr.vmem [resolvable:$true] %s2467_s29 }
 0x416   : > { %s3671_s25 = sld [smem:[#allocation28_spill]]  ;;  %s3535_s2 = scalar_lea.sflag [#allocation7], %s290_s23 }
 0x417   : > { %s3016_s0 = smov [#allocation10]  }
 0x41a   : > { %p3668_p1 = scmp.ne.s32.totalorder %s3667_s13, 0 }
 0x41b   : > { %s2619_s9 = sshll.u32 %s3670_s8, 3  ;;  %s2856_s8 = sshll.u32 %s3016_s0, 4  ;;  %s2857_s8 = int_to_ptr.vmem [resolvable:$false] %s2856_s8 }
 0x41c   : > { %s2627_s16 = scalar_select %p3668_p1, [#allocation3], [#allocation11] }
 0x41d   : > { %s3699_s11 = smov (!%p3668_p1, %s3669_s11), 0  ;;  %p2859_p0 = scmp.lt.s32.totalorder %s3526_s29, %s2857_s8 }
 0x41e   : > { %s2629_s5 = scalar_select %p3668_p1, [#allocation4], [#allocation12] }
 0x41f   : > { %s2455_s28 = sld [smem:[%s2627_s16 + %s3699_s11]]  ;;  %s2858_s16 = scalar_lea.vmem %s2857_s8, 2048 }
 0x420   : > { %s2456_s22 = sld [smem:[%s2629_s5 + %s3699_s11]]  ;;  %s2852_s11 = scalar_lea.vmem %s3526_s29, 1024 }
 0x421   : > { %p2853_p6 = scmp.ne.s32.totalorder %s3526_s29, %s2852_s11  ;;  %p2860_p11 = scmp.lt.s32.totalorder %s2858_s16, %s2852_s11 }
 0x423   : > { %p2854_p8 = pnand %p2853_p6, %p3668_p1  ;;  %p2861_p10 = por %p2860_p11, %p2859_p0 }
 0x425   : > { %s2618_s27 = sshll.u32 %s2455_s28, 3  ;;  %p2855_p4 = pneg %p2854_p8 }
 0x426   : > { %s2462_s24 = sadd.s32 %s2618_s27, %s2456_s22 }
 0x427   : > { %s2464_s20 = sadd.s32 %s2619_s9, %s2462_s24  ;;  %p2862_p2 = pnand %p2861_p10, %p2855_p4 }
 0x428   : > { %s2620_s4 = sshll.u32 %s2464_s20, 7 }
 0x429   : > { %s3531_s26 = scalar_lea.hbm %s3671_s25, %s2620_s4 }
 0x42a   : > { %2865 = shalt.err (!%p2862_p2)
}
 0x42b   : > { %s2866_s23 = scalar_lea.hbm %s3531_s26, 1024  ;;  %s2870_s22 = scalar_lea.hbm %s3671_s25, 2048 }
 0x42c   : > { %p2867_p9 = scmp.ne.s32.totalorder %s3531_s26, %s2866_s23  ;;  %p2871_p12 = scmp.lt.u32.totalorder %s3531_s26, %s3671_s25 }
 0x42d   : > { %p2872_p5 = scmp.lt.u32.totalorder %s2870_s22, %s2866_s23  ;;  %p2874_p6 = scmp.lt.u32.totalorder %s2866_s23, %s3531_s26 }
 0x42e   : > { %p2868_p3 = pnand %p2867_p9, %p3668_p1 }
 0x42f   : > { %p2873_p13 = por %p2872_p5, %p2871_p12 }
 0x430   : > { %p2869_p7 = pneg %p2868_p3 }
 0x431   : > { %p2875_p8 = por %p2874_p6, %p2873_p13 }
 0x433   : > { %p2876_p4 = pnand %p2875_p8, %p2869_p7 }
 0x435   : > { %2879 = shalt.err (!%p2876_p4)
}
 0x436   : > { %s3017_s24 = smov 128   ;;  %s3018_s20 = smov 8  }
 0x437   : > { %2631 = dma.vmem_to_hbm [thread:$0]  (%p3668_p1), %s3526_s29, 1024, %s3531_s26, %s3535_s2, %s3017_s24, %s3017_s24, %s3018_s20  }
 0x438 PF: > { %s3672_s4 = sld [smem:[#allocation17_spill]]  ;;  %p2645_p0 = scmp.ge.s32.totalorder %s3004_s15, 2 }
 0x439   : > { %p3673_p11 = scmp.ne.s32.totalorder %s3651_s18, 0 }
 0x43b   : > { %p2641_p10 = pnand %p2645_p0, %p3673_p11 }
 0x43e   : > { %s2482_s21 = sand.u32 1, %s3672_s4  }
 0x43f   : > { %s2483_s17 = scalar_lea.sflag [#allocation7], %s2482_s21 }
 0x440   : > { %2947 = dma.done.wait (!%p2641_p10), %s2483_s17, 1024  }
 0x441   : > { %2949 = vsyncadd (!%p2641_p10), %s2483_s17, 4294966272  ;;  %s31_s15 = sadd.s32 1, %s3004_s15   ;;  %s3675_s8 = sld [smem:[#allocation18_spill]] }
 0x442   : > { %p3564_p2 = scmp.ge.s32.totalorder %s31_s15, 6   ;;  %s3676_s2 = sld [smem:[#allocation25_spill]] }
 0x443   : > { %s3677_s18 = sld [smem:[#allocation21_spill]]  ;;  %s3678_s13 = sld [smem:[#allocation22_spill]] }
 0x444   : > { %s3679_s29 = sld [smem:[#allocation23_spill]]  ;;  %s3681_s0 = smov %s2956_s1 }
 0x445   : > { %s3682_s1 = smov %s2960_s30  ;;  %s3683_s30 = smov %s3201_s12 }
 0x446   : > { %s3684_s5 = smov %s2968_s6  ;;  %s3685_s6 = smov %s2972_s7 }
 0x447   : > { %s3686_s7 = smov %s3269_s19  ;;  %s3687_s9 = smov %s2984_s10 }
 0x448   : > { %s3688_s10 = smov %s3676_s2  ;;  %s3690_s12 = smov %s3000_s14 }
 0x449   : > { %s3689_s11 = smov %s3677_s18  ;;  %30 = sbr.rel (!%p3564_p2) target bundleno = 35 (0x23), region = 94 }
 0x44a   : > { %s3691_s14 = smov %s3679_s29 }
 0x450   :  { %2488 = vsyncpa [#allocation6], 1 }
 0x451   :  { %2490 = vsyncpa [#allocation6 + $0x1], 1 }
 0x452   :  { %2491 = vsyncpa [#allocation9], 1 }
 0x453   :  { %2493 = vsyncpa [#allocation9 + $0x1], 1 }
 0x454   :  { %2494 = vsyncpa [#allocation7], 1 }
 0x455   :  { %2496 = vsyncpa [#allocation7 + $0x1], 1 }

</bundles_post_ra>
